<compile_context>
chip_gen: v6e
topology: v6e:2x2x1
jax: 0.10.0
libtpu: 0.0.40
codegen_flags: <defaults>
</compile_context>

<pallas_src>
import jax
import jax.numpy as jnp
from jax import lax
from jax.experimental import pallas as pl
from jax.experimental.pallas import tpu as pltpu

EPS = 1e-5


def _round_up(x, m):
    return (x + m - 1) // m * m


# --------------------------------------------------------------------------- #
# Kernel: one (Bt, 2*DH) batch tile of the BN-folded MLP
# --------------------------------------------------------------------------- #
def neuralcf_mlp_kernel(x_ref, w1_ref, w2_ref, w3_ref, c_ref, out_ref):
    f32 = jnp.float32
    bf16 = jnp.bfloat16

    # Layer 1: x = [u | m] packed along lanes; W1 rows are laid out to match, so
    # torch.cat([u, m], dim=1) @ W1 is a single lane-dense MXU dot (f32 accum).
    h = jnp.dot(x_ref[...], w1_ref[...], preferred_element_type=f32)
    h = jnp.maximum(h + c_ref[0:1, :], 0.0)          # bias + ReLU in f32 (VPU)

    # Layer 2 (BN1 folded into w2 / bias row 1).
    h = jnp.dot(h.astype(bf16), w2_ref[...], preferred_element_type=f32)
    h = jnp.maximum(h + c_ref[1:2, :], 0.0)

    # Layer 3 (BN2 folded into w3 / bias row 2).
    h = jnp.dot(h.astype(bf16), w3_ref[...], preferred_element_type=f32)
    h = jnp.maximum(h + c_ref[2:3, :], 0.0)

    # Output layer (BN3 folded into wo/bo). Output width is 1, so instead of a
    # (HP, HP) MXU dot wasting 127/128 columns, multiply by the wo row on the VPU
    # and lane-reduce on the XLU (both units have slack here).
    o = jnp.sum(h * c_ref[3:4, :], axis=-1, keepdims=True) + c_ref[4:5, 0:1]
    # TODO(synk): pack scores lane-dense ((Bt//128, 128) tile) to replace this
    # masked (Bt, 1) store once the in-kernel sublane->lane relayout is vetted.
    out_ref[...] = o


# --------------------------------------------------------------------------- #
# Parameter prep: fold BN, fuse/pad weights, pack biases, pre-pad bf16 tables
# --------------------------------------------------------------------------- #
def prepare_kernel_params(params, weight_dtype=jnp.bfloat16, act_dtype=jnp.bfloat16):
    D = params["user_emb"].shape[1]
    H1, H2, H3 = (params["w1"].shape[1], params["w2"].shape[1], params["w3"].shape[1])

    # Eval-mode BatchNorm: BN(y) = y * scale + shift (running statistics).
    scale, shift = {}, {}
    for i in (1, 2, 3):
        s = params[f"g{i}"] * lax.rsqrt(params[f"var{i}"] + EPS)       # (1, Hi)
        scale[i] = s
        shift[i] = params[f"be{i}"] - params[f"mu{i}"] * s

    # Fold BN_i into Linear_{i+1}:
    #   (relu(z)*s + t) @ W + b  ==  relu(z) @ (s^T * W) + (t @ W + b)
    b1 = params["b1"]
    w2 = scale[1].T * params["w2"]
    b2 = params["b2"] + shift[1] @ params["w2"]
    w3 = scale[2].T * params["w3"]
    b3 = params["b3"] + shift[2] @ params["w3"]
    wo = scale[3].T * params["wo"]                  # (H3, 1)
    bo = params["bo"] + shift[3] @ params["wo"]     # (1, 1)

    DH = _round_up(D, 64)                           # per-embedding lane pad; K1 = 2*DH
    HP = _round_up(max(H1, H2, H3), 128)            # lane-aligned hidden width

    def pad2(a, rows, cols):
        return jnp.pad(a, ((0, rows - a.shape[0]), (0, cols - a.shape[1])))

    # Fused layer-1 weight: rows [0:D) take the user half, rows [DH:DH+D) take the
    # movie half, matching the lane layout of the packed [u | m] activations.
    w1u_p = pad2(params["w1"][:D], DH, HP)
    w1m_p = pad2(params["w1"][D:], DH, HP)
    w1f = jnp.concatenate([w1u_p, w1m_p], axis=0)   # (2*DH, HP)

    # Biases of layers 1-3, the folded wo row, and the folded bo scalar are packed
    # into ONE sublane-aligned (8, HP) f32 operand (each row padded to HP first --
    # this fixes the previous width-mismatch concat).
    consts = jnp.concatenate(
        [pad2(b1, 1, HP), pad2(b2, 1, HP), pad2(b3, 1, HP),
         pad2(wo.T, 1, HP), pad2(bo, 1, HP)], axis=0)
    consts = pad2(consts, 8, HP).astype(jnp.float32)

    return {
        "w1": w1f.astype(weight_dtype),
        "w2": pad2(w2, HP, HP).astype(weight_dtype),
        "w3": pad2(w3, HP, HP).astype(weight_dtype),
        "consts": consts,
        # Embedding tables pre-padded to DH lanes and pre-cast to the kernel's
        # activation dtype so jnp.take directly yields the kernel input layout.
        "user_table": pad2(params["user_emb"],
                           params["user_emb"].shape[0], DH).astype(act_dtype),
        "movie_table": pad2(params["movie_emb"],
                            params["movie_emb"].shape[0], DH).astype(act_dtype),
        "DH": DH,
        "HP": HP,
    }


# --------------------------------------------------------------------------- #
# Forward wrapper
# --------------------------------------------------------------------------- #
def neuralcf_forward(user_idx, movie_idx, params=None, prep=None, *,
                     batch_tile=4096, interpret=False):
    if prep is None:
        prep = prepare_kernel_params(params)
    DH, HP = prep["DH"], prep["HP"]

    # Embedding gather in plain JAX (XLA gather). Tables are already bf16 and
    # lane-padded, so gather + concat directly produce the kernel's input layout.
    # TODO(synk): for small tables, move the gather in-kernel (VMEM-resident tables
    # + scalar-prefetched indices) to drop the (B, 2*DH) HBM round trip entirely.
    u = jnp.take(prep["user_table"], user_idx, axis=0)    # (B, DH) bf16
    m = jnp.take(prep["movie_table"], movie_idx, axis=0)  # (B, DH) bf16
    x = jnp.concatenate([u, m], axis=1)                   # (B, 2*DH) bf16

    B = x.shape[0]
    Bp16 = _round_up(B, 16)                                # bf16 sublane packing
    n_steps = pl.cdiv(Bp16, min(batch_tile, Bp16))
    if n_steps > 1 and n_steps % 2 == 1:
        n_steps += 1                                       # v7x: even split over 2 TCs
    Bt = _round_up(pl.cdiv(Bp16, n_steps), 16)             # rows per grid step
    Bp = Bt * n_steps
    x = jnp.pad(x, ((0, Bp - B), (0, 0)))

    def const(shape):
        # Constant block index -> DMA'd once, stays VMEM-resident across the grid.
        return pl.BlockSpec(shape, lambda i: (0, 0))

    out = pl.pallas_call(
        neuralcf_mlp_kernel,
        out_shape=jax.ShapeDtypeStruct((Bp, 1), jnp.float32),
        grid=(n_steps,),
        in_specs=[
            pl.BlockSpec((Bt, 2 * DH), lambda i: (i, 0)),  # packed [u | m] rows
            const((2 * DH, HP)),                           # fused w1
            const((HP, HP)), const((HP, HP)),              # w2, w3 (BN folded)
            const((8, HP)),                                 # biases + wo row + bo
        ],
        out_specs=pl.BlockSpec((Bt, 1), lambda i: (i, 0)),
        compiler_params=pltpu.CompilerParams(
            dimension_semantics=("parallel",)),            # batch tiles across TCs
        interpret=interpret,
    )(x, prep["w1"], prep["w2"], prep["w3"], prep["consts"])

    # (Bp, 1) -> (B,): drop padded tail rows, match torch's output.squeeze().
    return out[:B, 0]


# --------------------------------------------------------------------------- #
# Parameter init (matches the PyTorch module's shapes/init) and references
# --------------------------------------------------------------------------- #
def init_params(key, num_users, num_movies, embedding_dim=50, layers=(100, 50, 20)):
    ks = jax.random.split(key, 16)
    params = {}
    # nn.Embedding: N(0, 1)
    params["user_emb"] = jax.random.normal(ks[0], (num_users, embedding_dim), jnp.float32)
    params["movie_emb"] = jax.random.normal(ks[1], (num_movies, embedding_dim), jnp.float32)

    in_dim = embedding_dim * 2
    for i, out_dim in enumerate(layers, start=1):
        bound = 1.0 / jnp.sqrt(in_dim)
        # PyTorch Linear weight is (out, in); stored transposed here as (in, out).
        params[f"w{i}"] = jax.random.uniform(ks[2 * i], (in_dim, out_dim), jnp.float32,
                                             -bound, bound)
        params[f"b{i}"] = jax.random.uniform(ks[2 * i + 1], (1, out_dim), jnp.float32,
                                             -bound, bound)
        # BatchNorm1d defaults: gamma=1, beta=0, running_mean=0, running_var=1.
        params[f"g{i}"] = jnp.ones((1, out_dim), jnp.float32)
        params[f"be{i}"] = jnp.zeros((1, out_dim), jnp.float32)
        params[f"mu{i}"] = jnp.zeros((1, out_dim), jnp.float32)
        params[f"var{i}"] = jnp.ones((1, out_dim), jnp.float32)
        in_dim = out_dim

    bound = 1.0 / jnp.sqrt(in_dim)
    params["wo"] = jax.random.uniform(ks[14], (in_dim, 1), jnp.float32, -bound, bound)
    params["bo"] = jax.random.uniform(ks[15], (1, 1), jnp.float32, -bound, bound)
    return params


def reference_forward(user_idx, movie_idx, params):
    """Pure-JAX f32 reference with the exact PyTorch eval-mode semantics."""
    u = jnp.take(params["user_emb"], user_idx, axis=0)
    m = jnp.take(params["movie_emb"], movie_idx, axis=0)
    x = jnp.concatenate([u, m], axis=-1)
    for i in (1, 2, 3):
        x = x @ params[f"w{i}"] + params[f"b{i}"]
        x = jnp.maximum(x, 0.0)
        x = ((x - params[f"mu{i}"]) * lax.rsqrt(params[f"var{i}"] + EPS)
             * params[f"g{i}"] + params[f"be{i}"])
    out = x @ params["wo"] + params["bo"]
    return jnp.squeeze(out, axis=-1)


def matched_reference(user_idx, movie_idx, prep):
    """Pure-JAX reference of the kernel's exact math (folded BN, bf16 operands)."""
    f32 = jnp.float32
    hi = lax.Precision.HIGHEST
    u = jnp.take(prep["user_table"], user_idx, axis=0).astype(f32)
    m = jnp.take(prep["movie_table"], movie_idx, axis=0).astype(f32)
    x = jnp.concatenate([u, m], axis=1)
    w1, w2, w3 = (prep[k].astype(f32) for k in ("w1", "w2", "w3"))
    c = prep["consts"].astype(f32)

    def bf(a):
        return a.astype(jnp.bfloat16).astype(f32)

    h = jnp.maximum(jnp.dot(x, w1, precision=hi) + c[0:1], 0.0)
    h = jnp.maximum(jnp.dot(bf(h), w2, precision=hi) + c[1:2], 0.0)
    h = jnp.maximum(jnp.dot(bf(h), w3, precision=hi) + c[2:3], 0.0)
    return jnp.sum(h * c[3:4], axis=-1) + c[4, 0]


if __name__ == "__main__":
    key = jax.random.PRNGKey(0)
    k_users, k_movies, k_params = jax.random.split(key, 3)

    num_users, num_movies = 30, 40
    embedding_dim = 50
    batch = 8

    params = init_params(k_params, num_users, num_movies, embedding_dim)
    prep = prepare_kernel_params(params)

    user_idx = jax.random.randint(k_users, (batch,), 0, num_users, dtype=jnp.int32)
    movie_idx = jax.random.randint(k_movies, (batch,), 0, num_movies, dtype=jnp.int32)

    out = neuralcf_forward(user_idx, movie_idx, params, prep)
    out = jax.block_until_ready(out)
    assert out.shape == (batch,), out.shape

    # 1) Tight check against a reference that consumes the exact same folded /
    #    padded bf16 operands as the kernel (validates the Pallas plumbing).
    ref_matched = matched_reference(user_idx, movie_idx, prep)
    assert jnp.allclose(out, ref_matched, atol=5e-3, rtol=5e-3), (out, ref_matched)

    # 2) Loose check against the exact f32 PyTorch eval-mode semantics
    #    (bf16 weights/activations + BN folding reassociate the f32 math).
    ref = reference_forward(user_idx, movie_idx, params)
    assert jnp.allclose(out, ref, atol=3e-2, rtol=5e-2), (out, ref)

    print("KERNEL_OK")
</pallas_src>

<mosaic_0001>
module attributes {stable_mosaic.version = 11 : i64} {
  func.func @neuralcf_mlp_kernel(%arg0: i32, %arg1: memref<16x128xbf16, #tpu.memory_space<vmem>>, %arg2: memref<128x128xbf16, #tpu.memory_space<vmem>>, %arg3: memref<128x128xbf16, #tpu.memory_space<vmem>>, %arg4: memref<128x128xbf16, #tpu.memory_space<vmem>>, %arg5: memref<8x128xf32, #tpu.memory_space<vmem>>, %arg6: memref<16x1xf32, #tpu.memory_space<vmem>>) attributes {dimension_semantics = [#tpu.dimension_semantics<parallel>], iteration_bounds = array<i64: 1>, scalar_prefetch = 0 : i64, scratch_operands = 0 : i64, tpu.core_type = #tpu.core_type<tc>, window_params = [{transform_indices = @transform_0, window_bounds = array<i64: 16, 128>}, {pipeline_mode = #tpu.pipeline_mode<synchronous>, transform_indices = @transform_1, window_bounds = array<i64: 128, 128>}, {pipeline_mode = #tpu.pipeline_mode<synchronous>, transform_indices = @transform_2, window_bounds = array<i64: 128, 128>}, {pipeline_mode = #tpu.pipeline_mode<synchronous>, transform_indices = @transform_3, window_bounds = array<i64: 128, 128>}, {pipeline_mode = #tpu.pipeline_mode<synchronous>, transform_indices = @transform_4, window_bounds = array<i64: 8, 128>}, {transform_indices = @transform_5, window_bounds = array<i64: 16, 1>}]} {
    %c0 = arith.constant 0 : index
    %c0_0 = arith.constant 0 : index
    %0 = vector.load %arg1[%c0, %c0_0] : memref<16x128xbf16, #tpu.memory_space<vmem>>, vector<16x128xbf16>
    %c0_1 = arith.constant 0 : index
    %c0_2 = arith.constant 0 : index
    %1 = vector.load %arg2[%c0_1, %c0_2] : memref<128x128xbf16, #tpu.memory_space<vmem>>, vector<128x128xbf16>
    %cst = arith.constant dense<0.000000e+00> : vector<16x128xf32>
    %2 = tpu.matmul %0, %1, %cst {dimension_numbers = #tpu.dot_dimension_numbers<[1], [0], [0], [1], [0, 0, 1, 1], [], []>} : vector<16x128xbf16>, vector<128x128xbf16>, vector<16x128xf32> -> vector<16x128xf32>
    %c0_3 = arith.constant 0 : index
    %c0_4 = arith.constant 0 : index
    %3 = vector.load %arg5[%c0_3, %c0_4] : memref<8x128xf32, #tpu.memory_space<vmem>>, vector<1x128xf32>
    %4 = vector.broadcast %3 : vector<1x128xf32> to vector<16x128xf32>
    %5 = arith.addf %2, %4 : vector<16x128xf32>
    %cst_5 = arith.constant 0.000000e+00 : f32
    %6 = vector.broadcast %cst_5 : f32 to vector<16x128xf32>
    %7 = arith.maximumf %5, %6 : vector<16x128xf32>
    %8 = arith.truncf %7 : vector<16x128xf32> to vector<16x128xbf16>
    %c0_6 = arith.constant 0 : index
    %c0_7 = arith.constant 0 : index
    %9 = vector.load %arg3[%c0_6, %c0_7] : memref<128x128xbf16, #tpu.memory_space<vmem>>, vector<128x128xbf16>
    %cst_8 = arith.constant dense<0.000000e+00> : vector<16x128xf32>
    %10 = tpu.matmul %8, %9, %cst_8 {dimension_numbers = #tpu.dot_dimension_numbers<[1], [0], [0], [1], [0, 0, 1, 1], [], []>} : vector<16x128xbf16>, vector<128x128xbf16>, vector<16x128xf32> -> vector<16x128xf32>
    %c1 = arith.constant 1 : index
    %c0_9 = arith.constant 0 : index
    %11 = vector.load %arg5[%c1, %c0_9] : memref<8x128xf32, #tpu.memory_space<vmem>>, vector<1x128xf32>
    %12 = vector.broadcast %11 : vector<1x128xf32> to vector<16x128xf32>
    %13 = arith.addf %10, %12 : vector<16x128xf32>
    %cst_10 = arith.constant 0.000000e+00 : f32
    %14 = vector.broadcast %cst_10 : f32 to vector<16x128xf32>
    %15 = arith.maximumf %13, %14 : vector<16x128xf32>
    %16 = arith.truncf %15 : vector<16x128xf32> to vector<16x128xbf16>
    %c0_11 = arith.constant 0 : index
    %c0_12 = arith.constant 0 : index
    %17 = vector.load %arg4[%c0_11, %c0_12] : memref<128x128xbf16, #tpu.memory_space<vmem>>, vector<128x128xbf16>
    %cst_13 = arith.constant dense<0.000000e+00> : vector<16x128xf32>
    %18 = tpu.matmul %16, %17, %cst_13 {dimension_numbers = #tpu.dot_dimension_numbers<[1], [0], [0], [1], [0, 0, 1, 1], [], []>} : vector<16x128xbf16>, vector<128x128xbf16>, vector<16x128xf32> -> vector<16x128xf32>
    %c2 = arith.constant 2 : index
    %c0_14 = arith.constant 0 : index
    %19 = vector.load %arg5[%c2, %c0_14] : memref<8x128xf32, #tpu.memory_space<vmem>>, vector<1x128xf32>
    %20 = vector.broadcast %19 : vector<1x128xf32> to vector<16x128xf32>
    %21 = arith.addf %18, %20 : vector<16x128xf32>
    %cst_15 = arith.constant 0.000000e+00 : f32
    %22 = vector.broadcast %cst_15 : f32 to vector<16x128xf32>
    %23 = arith.maximumf %21, %22 : vector<16x128xf32>
    %c3 = arith.constant 3 : index
    %c0_16 = arith.constant 0 : index
    %24 = vector.load %arg5[%c3, %c0_16] : memref<8x128xf32, #tpu.memory_space<vmem>>, vector<1x128xf32>
    %25 = vector.broadcast %24 : vector<1x128xf32> to vector<16x128xf32>
    %26 = arith.mulf %23, %25 : vector<16x128xf32>
    %cst_17 = arith.constant dense<0.000000e+00> : vector<16xf32>
    %27 = vector.multi_reduction <add>, %26, %cst_17 [1] : vector<16x128xf32> to vector<16xf32>
    %28 = vector.shape_cast %27 : vector<16xf32> to vector<16x1xf32>
    %c4 = arith.constant 4 : index
    %c0_18 = arith.constant 0 : index
    %29 = vector.load %arg5[%c4, %c0_18] : memref<8x128xf32, #tpu.memory_space<vmem>>, vector<1x1xf32>
    %30 = vector.broadcast %29 : vector<1x1xf32> to vector<16x1xf32>
    %31 = arith.addf %28, %30 : vector<16x1xf32>
    %c0_19 = arith.constant 0 : index
    %c0_20 = arith.constant 0 : index
    %32 = vector.load %arg6[%c0_19, %c0_20] : memref<16x1xf32, #tpu.memory_space<vmem>>, vector<16x1xf32>
    tpu.vector_store %arg6[%c0_19, %c0_20], %31 {strides = array<i32>} : memref<16x1xf32, #tpu.memory_space<vmem>>, vector<16x1xf32>,
    return
  }
  func.func @transform_0(%arg0: i32) -> (i32, i32) {
    %c0_i32 = arith.constant 0 : i32
    %c0_i32_0 = arith.constant 0 : i32
    return %arg0, %c0_i32 : i32, i32
  }
  func.func @transform_1(%arg0: i32) -> (i32, i32) {
    %c0_i32 = arith.constant 0 : i32
    %c0_i32_0 = arith.constant 0 : i32
    %c0_i32_1 = arith.constant 0 : i32
    return %c0_i32, %c0_i32_0 : i32, i32
  }
  func.func @transform_2(%arg0: i32) -> (i32, i32) {
    %c0_i32 = arith.constant 0 : i32
    %c0_i32_0 = arith.constant 0 : i32
    %c0_i32_1 = arith.constant 0 : i32
    return %c0_i32, %c0_i32_0 : i32, i32
  }
  func.func @transform_3(%arg0: i32) -> (i32, i32) {
    %c0_i32 = arith.constant 0 : i32
    %c0_i32_0 = arith.constant 0 : i32
    %c0_i32_1 = arith.constant 0 : i32
    return %c0_i32, %c0_i32_0 : i32, i32
  }
  func.func @transform_4(%arg0: i32) -> (i32, i32) {
    %c0_i32 = arith.constant 0 : i32
    %c0_i32_0 = arith.constant 0 : i32
    %c0_i32_1 = arith.constant 0 : i32
    return %c0_i32, %c0_i32_0 : i32, i32
  }
  func.func @transform_5(%arg0: i32) -> (i32, i32) {
    %c0_i32 = arith.constant 0 : i32
    %c0_i32_0 = arith.constant 0 : i32
    return %arg0, %c0_i32 : i32, i32
  }
}

</mosaic_0001>

<bundles_post_ra>
// kernel: tpu_custom_call.1
= control target key start
LH: loop header
LB: loop body
LE: loop exit
PB: predicated region body
PF: predicated region fallthrough
CT: control target
= control target key end

     0   :  { %10 = vsyncpa [#allocation3], 0  ;;  %s820_s0 = inlined_call_operand.hbm [shape: bf16[16,128], index: 0, kind: input, shape index: {}]   ;;  %s821_s1 = inlined_call_operand.hbm [shape: bf16[128,128], index: 1, kind: input, shape index: {}]   ;;  %s822_s2 = inlined_call_operand.hbm [shape: bf16[128,128], index: 2, kind: input, shape index: {}]   ;;  %s823_s3 = inlined_call_operand.hbm [shape: bf16[128,128], index: 3, kind: input, shape index: {}]   ;;  %s824_s4 = inlined_call_operand.hbm [shape: f32[8,128], index: 4, kind: input, shape index: {}]   ;;  %s825_s5 = inlined_call_operand.vmem [shape: f32[16,1], index: 5, kind: output, shape index: {}]  }
   0x1   :  { %11 = vsyncpa [#allocation5], 0 }
   0x2   :  { %12 = vsyncpa [#allocation8], 0  ;;  %s718_s18 = smov [#allocation4]   ;;  %s719_s20 = smov [#allocation7]  }
   0x3   :  { %s30_s19 = sshll.u32 %s718_s18, 4  ;;  %s54_s21 = sshll.u32 %s719_s20, 4  ;;  %s31_s19 = int_to_ptr.vmem [resolvable:$true] %s30_s19  ;;  %s55_s21 = int_to_ptr.vmem [resolvable:$true] %s54_s21 }
   0x4   :  { %s620_s22 = scalar_lea.vmem %s31_s19, 1024  ;;  %p625_p1 = scmp.lt.s32.totalorder %s31_s19, %s31_s19 }
   0x5   :  { %p621_p0 = scmp.ne.s32.totalorder %s31_s19, %s620_s22  ;;  %p626_p2 = scmp.lt.s32.totalorder %s620_s22, %s620_s22 }
   0x7   :  { %p627_p3 = por %p626_p2, %p625_p1 }
   0x9   :  { %p628_p4 = pnand %p627_p3, %p621_p0 }
   0xb   :  { %631 = shalt.err (!%p628_p4)
}
   0xc   :  { %s720_s23 = smov 64   ;;  %s721_s24 = smov 4  }
   0xd   :  { %36 = dma.hbm_to_vmem [thread:$0]  %s821_s1, 1024, %s31_s19, [#allocation5], %s720_s23, %s720_s23, %s721_s24  }
   0xe   :  { %s640_s27 = scalar_lea.vmem %s55_s21, 1024  ;;  %p645_p6 = scmp.lt.s32.totalorder %s55_s21, %s55_s21 }
   0xf   :  { %p641_p5 = scmp.ne.s32.totalorder %s55_s21, %s640_s27  ;;  %p646_p7 = scmp.lt.s32.totalorder %s640_s27, %s640_s27 }
  0x11   :  { %p647_p8 = por %p646_p7, %p645_p6 }
  0x13   :  { %p648_p9 = pnand %p647_p8, %p641_p5 }
  0x15   :  { %651 = shalt.err (!%p648_p9)
}
  0x16   :  { %60 = dma.hbm_to_vmem [thread:$0]  %s823_s3, 1024, %s55_s21, [#allocation8], %s720_s23, %s720_s23, %s721_s24  }
  0x17   :  { %s722_s30 = smov [#allocation2]   ;;  %s723_s7 = smov [#allocation6]  }
  0x18   :  { %s18_s6 = sshll.u32 %s722_s30, 4  ;;  %s42_s8 = sshll.u32 %s723_s7, 4  ;;  %s19_s6 = int_to_ptr.vmem [resolvable:$true] %s18_s6  ;;  %s43_s8 = int_to_ptr.vmem [resolvable:$true] %s42_s8 }
  0x19   :  { %s660_s1 = scalar_lea.vmem %s19_s6, 128  ;;  %p665_p11 = scmp.lt.s32.totalorder %s19_s6, %s19_s6 }
  0x1a   :  { %p661_p10 = scmp.ne.s32.totalorder %s19_s6, %s660_s1  ;;  %p666_p12 = scmp.lt.s32.totalorder %s660_s1, %s660_s1 }
  0x1c   :  { %p667_p13 = por %p666_p12, %p665_p11 }
  0x1e   :  { %p668_p0 = pnand %p667_p13, %p661_p10 }
  0x20   :  { %671 = shalt.err (!%p668_p0)
}
  0x21   :  { %24 = dma.hbm_to_vmem [thread:$0]  %s820_s0, 128, %s19_s6, [#allocation3], %s720_s23, %s720_s23, %s721_s24  }
  0x22   :  { %s680_s3 = scalar_lea.vmem %s43_s8, 1024  ;;  %p685_p2 = scmp.lt.s32.totalorder %s43_s8, %s43_s8 }
  0x23   :  { %p681_p1 = scmp.ne.s32.totalorder %s43_s8, %s680_s3  ;;  %p686_p3 = scmp.lt.s32.totalorder %s680_s3, %s680_s3 }
  0x25   :  { %p687_p4 = por %p686_p3, %p685_p2 }
  0x27   :  { %p688_p5 = pnand %p687_p4, %p681_p1 }
  0x29   :  { %691 = shalt.err (!%p688_p5)
}
  0x2a   :  { %48 = dma.hbm_to_vmem [thread:$0]  %s822_s2, 1024, %s43_s8, [#allocation5], %s720_s23, %s720_s23, %s721_s24  }
  0x2b   :  { %s724_s13 = smov [#allocation9]  }
  0x2c   :  { %s67_s14 = sshll.u32 %s724_s13, 4  ;;  %s68_s14 = int_to_ptr.vmem [resolvable:$true] %s67_s14 }
  0x2d   :  { %s700_s15 = scalar_lea.vmem %s68_s14, 128  ;;  %p705_p7 = scmp.lt.s32.totalorder %s68_s14, %s68_s14 }
  0x2e   :  { %p701_p6 = scmp.ne.s32.totalorder %s68_s14, %s700_s15  ;;  %p706_p8 = scmp.lt.s32.totalorder %s700_s15, %s700_s15 }
  0x30   :  { %p707_p9 = por %p706_p8, %p705_p7 }
  0x32   :  { %p708_p10 = pnand %p707_p9, %p701_p6 }
  0x34   :  { %711 = shalt.err (!%p708_p10)
}
  0x35   :  { %70 = dma.hbm_to_vmem [thread:$0]  %s824_s4, 128, %s68_s14, [#allocation8]  }
  0x36   :  { %712 = dma.done.wait [#allocation3], 128  }
  0x37   :  { %713 = vsyncadd [#allocation3], 4294967168 }
  0x38   :  { %714 = dma.done.wait [#allocation5], 2048  }
  0x39   :  { %715 = vsyncadd [#allocation5], 4294965248 }
  0x3a   :  { %716 = dma.done.wait [#allocation8], 1152  }
  0x3b   :  { %717 = vsyncadd [#allocation8], 4294966144  ;;  %v725_v0 = vmov 0.0   ;;  %vm726_vm0 = vmmov 0   ;;  %v587_v1 = vld [vmem:[#allocation4 + $0x38] sm:$0xff]   ;;  %v588_v2 = vld [vmem:[#allocation4 + $0x30] sm:$0xff]  }
  0x3c   :  { %518 = vmatprep.subr.bf16.mxu0 %v725_v0  ;;  %534 = vmatprep.mubr.msk.bf16.mxu0 %vm726_vm0, %v725_v0  ;;  %v589_v3 = vld [vmem:[#allocation4 + $0x28] sm:$0xff]   ;;  %v596_v4 = vld [vmem:[#allocation6 + $0x38] sm:$0xff]   ;;  %v590_v5 = vld [vmem:[#allocation4 + $0x20] sm:$0xff]   ;;  %vm451_vm1 = vcmask 7168  }
  0x3d   :  { %538 = vmatprep.subr.bf16.mxu1 %v725_v0  ;;  %554 = vmatprep.mubr.msk.bf16.mxu1 %vm726_vm0, %v725_v0  ;;  %v597_v6 = vld [vmem:[#allocation6 + $0x30] sm:$0xff]   ;;  %v591_v7 = vld [vmem:[#allocation4 + $0x18] sm:$0xff]   ;;  %v598_v8 = vld [vmem:[#allocation6 + $0x28] sm:$0xff]  }
  0x3e   :  { %519 = vmatpush3.bf16.msra.mxu0 %v587_v1  ;;  %539 = vmatpush3.bf16.msra.mxu1 %v596_v4  ;;  %v592_v9 = vld [vmem:[#allocation4 + $0x10] sm:$0xff]   ;;  %v599_v10 = vld [vmem:[#allocation6 + $0x20] sm:$0xff]   ;;  %v593_v11 = vld [vmem:[#allocation4 + $0x8] sm:$0xff]  }
  0x3f   :  { %520 = vmatprep.subr.bf16.mxu0 %v725_v0  ;;  %540 = vmatprep.subr.bf16.mxu1 %v725_v0  ;;  %v600_v12 = vld [vmem:[#allocation6 + $0x18] sm:$0xff]   ;;  %v594_v13 = vld [vmem:[#allocation4] sm:$0xff]   ;;  %v601_v15 = vld [vmem:[#allocation6 + $0x10] sm:$0xff]  }
  0x40   :  { %v595_v14 = vld [vmem:[#allocation2] sm:$0xff]   ;;  %v602_v16 = vld [vmem:[#allocation6 + $0x8] sm:$0xff]   ;;  %v603_v17 = vld [vmem:[#allocation6] sm:$0xff]  }
  0x41   :  { %v604_v18 = vld [vmem:[#allocation7 + $0x38] sm:$0xff]   ;;  %v605_v19 = vld [vmem:[#allocation7 + $0x30] sm:$0xff]   ;;  %v606_v20 = vld [vmem:[#allocation7 + $0x28] sm:$0xff]  }
  0x42   :  { %521 = vmatpush3.bf16.msra.mxu0 %v588_v2  ;;  %541 = vmatpush3.bf16.msra.mxu1 %v597_v6  ;;  %v607_v21 = vld [vmem:[#allocation7 + $0x20] sm:$0xff]   ;;  %v608_v22 = vld [vmem:[#allocation7 + $0x18] sm:$0xff]   ;;  %v609_v33 = vld [vmem:[#allocation7 + $0x10] sm:$0xff]  }
  0x43   :  { %522 = vmatprep.subr.bf16.mxu0 %v725_v0  ;;  %542 = vmatprep.subr.bf16.mxu1 %v725_v0  ;;  %v461_v23 = vld [vmem:[#allocation9] ss:$0 sm:$0xff]  ;;  %v610_v34 = vld [vmem:[#allocation7 + $0x8] sm:$0xff]   ;;  %v471_v36 = vld [vmem:[#allocation9 + $0x1] ss:$0 sm:$0xff] }
  0x44   :  { %v611_v35 = vld [vmem:[#allocation7] sm:$0xff]  }
  0x45   :  { %v480_v46 = vld [vmem:[#allocation9 + $0x2] ss:$0 sm:$0xff]  ;;  %v489_v50 = vld [vmem:[#allocation9 + $0x3] ss:$0 sm:$0xff]  ;;  %v490_v58 = vld [vmem:[#allocation9 + $0x4] ss:$0 sm:$0xff] }
  0x46   :  { %523 = vmatpush3.bf16.msra.mxu0 %v589_v3  ;;  %543 = vmatpush3.bf16.msra.mxu1 %v598_v8 }
  0x47   :  { %524 = vmatprep.subr.bf16.mxu0 %v725_v0  ;;  %544 = vmatprep.subr.bf16.mxu1 %v725_v0 }
  0x4a   :  { %525 = vmatpush3.bf16.msra.mxu0 %v590_v5  ;;  %545 = vmatpush3.bf16.msra.mxu1 %v599_v10 }
  0x4b   :  { %526 = vmatprep.subr.bf16.mxu0 %v725_v0  ;;  %546 = vmatprep.subr.bf16.mxu1 %v725_v0 }
  0x4e   :  { %527 = vmatpush3.bf16.msra.mxu0 %v591_v7  ;;  %547 = vmatpush3.bf16.msra.mxu1 %v600_v12 }
  0x4f   :  { %528 = vmatprep.subr.bf16.mxu0 %v725_v0  ;;  %548 = vmatprep.subr.bf16.mxu1 %v725_v0 }
  0x52   :  { %529 = vmatpush3.bf16.msra.mxu0 %v592_v9  ;;  %549 = vmatpush3.bf16.msra.mxu1 %v601_v15 }
  0x53   :  { %530 = vmatprep.subr.bf16.mxu0 %v725_v0  ;;  %550 = vmatprep.subr.bf16.mxu1 %v725_v0 }
  0x56   :  { %531 = vmatpush3.bf16.msra.mxu0 %v593_v11  ;;  %551 = vmatpush3.bf16.msra.mxu1 %v602_v16 }
  0x57   :  { %532 = vmatprep.subr.bf16.mxu0 %v725_v0  ;;  %552 = vmatprep.subr.bf16.mxu1 %v725_v0 }
  0x5a   :  { %533 = vmatpush3.bf16.msra.mxu0 %v594_v13  ;;  %553 = vmatpush3.bf16.msra.mxu1 %v603_v17 }
  0x5b   :  { %558 = vmatprep.subr.bf16.mxu0 %v725_v0 }
  0x5d   :  { %535 = vmatmul.mubr.bf16.vlgmr.msra.gmra.mxu0 %v595_v14 }
  0x5e   :  { %574 = vmatprep.mubr.msk.bf16.mxu0 %vm726_vm0, %v725_v0  ;;  %559 = vmatpush3.bf16.msra.mxu0 %v604_v18 }
  0x5f   :  { %560 = vmatprep.subr.bf16.mxu0 %v725_v0 }
  0x62   :  { %561 = vmatpush3.bf16.msra.mxu0 %v605_v19 }
  0x63   :  { %562 = vmatprep.subr.bf16.mxu0 %v725_v0 }
  0x66   :  { %563 = vmatpush3.bf16.msra.mxu0 %v606_v20 }
  0x67   :  { %564 = vmatprep.subr.bf16.mxu0 %v725_v0 }
  0x6a   :  { %565 = vmatpush3.bf16.msra.mxu0 %v607_v21 }
  0x6b   :  { %566 = vmatprep.subr.bf16.mxu0 %v725_v0 }
  0x6e   :  { %567 = vmatpush3.bf16.msra.mxu0 %v608_v22 }
  0x6f   :  { %568 = vmatprep.subr.bf16.mxu0 %v725_v0 }
  0x72   :  { %569 = vmatpush3.bf16.msra.mxu0 %v609_v33 }
  0x73   :  { %570 = vmatprep.subr.bf16.mxu0 %v725_v0 }
  0x76   :  { %571 = vmatpush3.bf16.msra.mxu0 %v610_v34 }
  0x77   :  { %572 = vmatprep.subr.bf16.mxu0 %v725_v0 }
  0x7a   :  { %573 = vmatpush3.bf16.msra.mxu0 %v611_v35 }
 0x11d   :  { %v198_v24 = vpop.f32.mrf.mxu0 }
 0x11e   :  { %v199_v26 = vadd.f32 %v461_v23, %v198_v24 }
 0x11f   :  { %v536_v25 = vpop.f32.mrf.mxu0 }
 0x120   :  { %v205_v30 = vmax.f32 %v199_v26, 0.0 }
 0x121   :  { %v201_v27 = vpop.f32.mrf.mxu0 }
 0x122   :  { %v202_v28 = vadd.f32 %v461_v23, %v201_v27 }
 0x123   :  { %v537_v29 = vpop.f32.mrf.mxu0 }
 0x124   :  { %v206_v31 = vmax.f32 %v202_v28, 0.0 }
 0x126   :  { %v207_v32 = vpack.c.bf16 %v206_v31, %v205_v30 }
 0x128   :  { %555 = vmatmul.mubr.bf16.vlgmr.msra.gmra.mxu1 %v207_v32 }
 0x1e8   :  { %v311_v37 = vpop.f32.mrf.mxu1 }
 0x1e9   :  { %v312_v39 = vadd.f32 %v471_v36, %v311_v37 }
 0x1ea   :  { %v556_v38 = vpop.f32.mrf.mxu1 }
 0x1eb   :  { %v318_v43 = vmax.f32 %v312_v39, 0.0 }
 0x1ec   :  { %v314_v40 = vpop.f32.mrf.mxu1 }
 0x1ed   :  { %v315_v41 = vadd.f32 %v471_v36, %v314_v40 }
 0x1ee   :  { %v557_v42 = vpop.f32.mrf.mxu1 }
 0x1ef   :  { %v319_v44 = vmax.f32 %v315_v41, 0.0 }
 0x1f1   :  { %v320_v45 = vpack.c.bf16 %v319_v44, %v318_v43 }
 0x1f3   :  { %575 = vmatmul.mubr.bf16.vlgmr.msra.gmra.mxu0 %v320_v45 }
 0x2b3   :  { %v424_v47 = vpop.f32.mrf.mxu0 }
 0x2b4   :  { %v425_v48 = vadd.f32 %v480_v46, %v424_v47 }
 0x2b5   :  { %v576_v49 = vpop.f32.mrf.mxu0 }
 0x2b6   :  { %v431_v51 = vmax.f32 %v425_v48, 0.0 }
 0x2b7   :  { %v427_v52 = vpop.f32.mrf.mxu0 }
 0x2b8   :  { %v428_v53 = vadd.f32 %v480_v46, %v427_v52  ;;  %v438_v54 = vmul.f32 %v489_v50, %v431_v51 }
 0x2b9   :  { %v577_v55 = vpop.f32.mrf.mxu0 }
 0x2ba   :  { %v432_v56 = vmax.f32 %v428_v53, 0.0  ;;  %440 = vadd.xlane.f32.xlu0 %v438_v54 }
 0x2bc   :  { %v439_v57 = vmul.f32 %v489_v50, %v432_v56 }
 0x2be   :  { %442 = vadd.xlane.f32.xlu0 %v439_v57 }
 0x343   :  { %v441_v59 = vpop.xlane.xlu0 %440 }
 0x344   :  { %v449_v60 = vadd.f32 %v490_v58, %v441_v59 }
 0x346   :  { %452 = vst.msk [vmem:[%s825_s5] sm:$0xff] %vm451_vm1, %v449_v60 }
 0x347   :  { %v443_v61 = vpop.xlane.xlu0 %442 }
 0x348   :  { %v450_v62 = vadd.f32 %v490_v58, %v443_v61 }
 0x34a   :  { %453 = vst.msk [vmem:[%s825_s5 + $0x8] sm:$0xff] %vm451_vm1, %v450_v62 }
 0x34b   :  { %458 = vsyncpa [#allocation3], 1 }
 0x34c   :  { %459 = vsyncpa [#allocation5], 1 }
 0x34d   :  { %460 = vsyncpa [#allocation8], 1 }

</bundles_post_ra>
